<compile_context>
chip_gen: v7x
topology: tpu7x:2x2x1
jax: 0.10.0
libtpu: 0.0.40
codegen_flags: <defaults>
</compile_context>

<pallas_src>
import jax
import jax.numpy as jnp
import numpy as np
from jax.experimental import pallas as pl
from jax.experimental.pallas import tpu as pltpu

HIDDEN = 200          # logical hidden width (PyTorch spec)
HIDDEN_PAD = 256      # lane-aligned hidden width (2 x 128)
HEAD_PAD = 128        # merged fc5 head width (mean lanes | logvar lanes)
LV_OFFSET = 64        # logvar columns start at this lane inside the merged head


def _round_up(n, m):
    return ((n + m - 1) // m) * m


def _swish(x):
    return x * jax.nn.sigmoid(x)


def _softplus(x):
    # numerically stable softplus, matches F.softplus defaults
    return jnp.maximum(x, 0.0) + jnp.log1p(jnp.exp(-jnp.abs(x)))


def ptmodel_kernel(x_ref, w1_ref, w234_ref, w5_ref, b14_ref, head_ref, out_ref):
    cdt = w234_ref.dtype  # MXU input dtype for the big layers; accumulation is f32

    # fc1 (normalization folded into w1/b1 on the host).  Kept in f32: the
    # contracting dim is the raw in_features, fc1 is ~2% of total MACs.
    h = _swish(jnp.dot(x_ref[...], w1_ref[...],
                       preferred_element_type=jnp.float32) + b14_ref[0:1, :])

    # fc2..fc4 with swish.  Elementwise stays f32; cast only right before the dot.
    for i in range(3):
        h = _swish(jnp.dot(h.astype(cdt), w234_ref[i],
                           preferred_element_type=jnp.float32) + b14_ref[i + 1:i + 2, :])

    # Merged fc5 head: one matmul produces mean (lanes < 64) and raw logvar
    # (lanes >= 64) in a single 128-lane vector.
    o = jnp.dot(h.astype(cdt), w5_ref[...],
                preferred_element_type=jnp.float32) + head_ref[0:1, :]

    maxlv = head_ref[1:2, :]
    minlv = head_ref[2:3, :]
    lv = maxlv - _softplus(maxlv - o)
    lv = minlv + _softplus(lv - minlv)

    lane = jax.lax.broadcasted_iota(jnp.int32, o.shape, 1)
    out_ref[...] = jnp.where(lane >= LV_OFFSET, jnp.exp(lv), o).astype(out_ref.dtype)


def prepare_packed_params(params, in_features, out_features,
                          compute_dtype=jnp.float32):
    """Exact algebraic repack: fold (x-mu)/sigma into fc1, zero-pad hidden dims to
    256 lanes, merge the fc5 mean/logvar heads into one 128-lane weight, stack the
    small constants, cast the big weights to the MXU compute dtype."""
    half = out_features // 2
    assert half <= LV_OFFSET, "merged fc5 head requires out_features // 2 <= 64"
    in_pad = _round_up(in_features, 8)     # 24 -> 24 (no-op for halfcheetah)

    mu, sigma = params["mu"], params["sigma"]            # (1, in_f)
    w1, b1 = params["w1"], params["b1"]                  # (in_f, 200), (1, 200)
    # ((x - mu)/sigma) @ w1 + b1  ==  x @ (w1 / sigma^T) + (b1 - (mu/sigma) @ w1)
    w1f = w1 / sigma.reshape(-1, 1)
    b1f = b1 - (mu / sigma) @ w1

    def pad2(a, rows, cols):
        return jnp.pad(a, ((0, rows - a.shape[0]), (0, cols - a.shape[1])))

    p = {}
    # fc1 weight stays f32 (keeps the unaligned K dim fully sublane-aligned).
    p["w1"] = pad2(w1f, in_pad, HIDDEN_PAD).astype(jnp.float32)
    # fc2..fc4 stacked into one operand, indexed statically in the kernel.
    p["w234"] = jnp.stack(
        [pad2(params[f"w{i}"], HIDDEN_PAD, HIDDEN_PAD) for i in (2, 3, 4)]
    ).astype(compute_dtype)

    # Merged fc5 head: mean cols -> lanes [0, half), logvar cols -> [64, 64+half).
    w5, b5 = params["w5"], params["b5"]
    w5c = jnp.zeros((HIDDEN_PAD, HEAD_PAD), jnp.float32)
    w5c = w5c.at[:HIDDEN, :half].set(w5[:, :half])
    w5c = w5c.at[:HIDDEN, LV_OFFSET:LV_OFFSET + half].set(w5[:, half:])
    p["w5"] = w5c.astype(compute_dtype)

    # Stacked hidden biases (f32, row i = bias of fc(i+1); b1 is the folded one).
    p["b14"] = jnp.concatenate(
        [pad2(b, 1, HIDDEN_PAD) for b in (b1f, params["b2"], params["b3"], params["b4"])],
        axis=0)

    # Head constants: row 0 = merged b5, row 1 = max_logvar, row 2 = min_logvar.
    # Padded lanes get the default clamp values so discarded lanes stay finite.
    b5c = jnp.zeros((1, HEAD_PAD), jnp.float32)
    b5c = b5c.at[:, :half].set(b5[:, :half])
    b5c = b5c.at[:, LV_OFFSET:LV_OFFSET + half].set(b5[:, half:])
    maxlv = jnp.full((1, HEAD_PAD), 0.5, jnp.float32)
    maxlv = maxlv.at[:, LV_OFFSET:LV_OFFSET + half].set(params["max_logvar"])
    minlv = jnp.full((1, HEAD_PAD), -10.0, jnp.float32)
    minlv = minlv.at[:, LV_OFFSET:LV_OFFSET + half].set(params["min_logvar"])
    p["head"] = jnp.concatenate([b5c, maxlv, minlv], axis=0)   # (3, 128)

    meta = dict(in_pad=in_pad, half=half, compute_dtype=compute_dtype)
    return p, meta


_PARAM_ORDER = ("w1", "w234", "w5", "b14", "head")


def _pick_block_b(B):
    """Batch tile: >=2 grid steps when possible (v7x megacore), 8-row aligned,
    capped at 1024 rows so VMEM stays well under the scoped default on all gens."""
    if B > 2048:
        return 1024
    if B <= 8:
        return _round_up(max(B, 1), 8)
    return _round_up(pl.cdiv(B, 2), 8)


def ptmodel_forward(x, packed, meta, *, block_b=None, out_dtype=jnp.float32):
    """Pallas forward of PtModel (ret_logvar=False -> (mean, exp(logvar)))."""
    B = x.shape[0]
    in_pad, half = meta["in_pad"], meta["half"]

    x = x.astype(jnp.float32)
    if x.shape[1] != in_pad:                       # only if in_features % 8 != 0
        x = jnp.pad(x, ((0, 0), (0, in_pad - x.shape[1])))

    if block_b is None:
        block_b = _pick_block_b(B)
    B_pad = _round_up(B, block_b)
    if B_pad != B:                                 # zero-row pad, sliced off below
        x = jnp.pad(x, ((0, B_pad - B), (0, 0)))
    grid = (B_pad // block_b,)

    def rep_spec(shape):
        # whole-array block, resident across every batch grid step
        return pl.BlockSpec(shape, lambda i: tuple(0 for _ in shape))

    in_specs = [pl.BlockSpec((block_b, in_pad), lambda i: (i, 0))]
    in_specs += [rep_spec(packed[k].shape) for k in _PARAM_ORDER]

    out = pl.pallas_call(
        ptmodel_kernel,
        out_shape=jax.ShapeDtypeStruct((B_pad, HEAD_PAD), out_dtype),
        grid_spec=pltpu.PrefetchScalarGridSpec(
            num_scalar_prefetch=0,
            grid=grid,
            in_specs=in_specs,
            out_specs=pl.BlockSpec((block_b, HEAD_PAD), lambda i: (i, 0)),
        ),
        compiler_params=pltpu.CompilerParams(
            dimension_semantics=("parallel",),
        ),
    )(x, *[packed[k] for k in _PARAM_ORDER])

    mean = out[:B, :half]
    var = out[:B, LV_OFFSET:LV_OFFSET + half]
    return mean, var


def make_params(key, in_features, out_features):
    """Deterministic synthetic parameter init (weights stored as (in, out))."""
    ks = jax.random.split(key, 12)
    dims = [(in_features, HIDDEN), (HIDDEN, HIDDEN), (HIDDEN, HIDDEN),
            (HIDDEN, HIDDEN), (HIDDEN, out_features)]
    params = {}
    for idx, (fan_in, fan_out) in enumerate(dims, start=1):
        bound = 1.0 / np.sqrt(fan_in)
        params[f"w{idx}"] = jax.random.uniform(
            ks[2 * (idx - 1)], (fan_in, fan_out), jnp.float32, -bound, bound)
        params[f"b{idx}"] = jax.random.uniform(
            ks[2 * (idx - 1) + 1], (1, fan_out), jnp.float32, -bound, bound)
    # Non-trivial mu/sigma so the host-side normalization fold is exercised.
    params["mu"] = jax.random.normal(ks[10], (1, in_features), jnp.float32) * 0.1
    params["sigma"] = 1.0 + jax.random.uniform(ks[11], (1, in_features), jnp.float32)
    params["max_logvar"] = jnp.ones((1, out_features // 2), jnp.float32) / 2.0
    params["min_logvar"] = -jnp.ones((1, out_features // 2), jnp.float32) * 10.0
    return params


def ptmodel_ref(x, params):
    """Pure-JAX reference (mirrors the PyTorch forward with ret_logvar=False)."""
    h = (x - params["mu"]) / params["sigma"]
    for i in range(1, 5):
        h = h @ params[f"w{i}"] + params[f"b{i}"]
        h = h * jax.nn.sigmoid(h)
    o = h @ params["w5"] + params["b5"]
    half = o.shape[1] // 2
    mean, logvar = o[:, :half], o[:, half:]
    logvar = params["max_logvar"] - jax.nn.softplus(params["max_logvar"] - logvar)
    logvar = params["min_logvar"] + jax.nn.softplus(logvar - params["min_logvar"])
    return mean, jnp.exp(logvar)


if __name__ == "__main__":
    IN_FEATURES = 24     # halfcheetah obs + act
    OUT_FEATURES = 36    # 18 mean + 18 logvar
    BATCH = 8

    key = jax.random.PRNGKey(0)
    k_x, k_p, k_x2 = jax.random.split(key, 3)
    x = jax.random.normal(k_x, (BATCH, IN_FEATURES), jnp.float32)
    params = make_params(k_p, IN_FEATURES, OUT_FEATURES)
    mean_ref, var_ref = ptmodel_ref(x, params)

    # f32 compute path (tight check vs. reference).
    packed32, meta32 = prepare_packed_params(params, IN_FEATURES, OUT_FEATURES,
                                             compute_dtype=jnp.float32)
    mean, var = ptmodel_forward(x, packed32, meta32)
    jax.block_until_ready((mean, var))
    np.testing.assert_allclose(np.asarray(mean), np.asarray(mean_ref), atol=1e-4, rtol=1e-4)
    np.testing.assert_allclose(np.asarray(var), np.asarray(var_ref), atol=1e-4, rtol=1e-4)

    # bf16 weights/activations with f32 MXU accumulation (fast path on v5e/v6e/v7x).
    packed16, meta16 = prepare_packed_params(params, IN_FEATURES, OUT_FEATURES,
                                             compute_dtype=jnp.bfloat16)
    mean_b, var_b = ptmodel_forward(x, packed16, meta16)
    jax.block_until_ready((mean_b, var_b))
    np.testing.assert_allclose(np.asarray(mean_b), np.asarray(mean_ref), atol=5e-2, rtol=5e-2)
    np.testing.assert_allclose(np.asarray(var_b), np.asarray(var_ref), atol=5e-2, rtol=5e-2)

    # Exercise the multi-step grid + non-divisible-batch (row padding) path.
    x2 = jax.random.normal(k_x2, (20, IN_FEATURES), jnp.float32)
    mr2, vr2 = ptmodel_ref(x2, params)
    m2, v2 = ptmodel_forward(x2, packed32, meta32)
    jax.block_until_ready((m2, v2))
    np.testing.assert_allclose(np.asarray(m2), np.asarray(mr2), atol=1e-4, rtol=1e-4)
    np.testing.assert_allclose(np.asarray(v2), np.asarray(vr2), atol=1e-4, rtol=1e-4)

    print("KERNEL_OK")
</pallas_src>

<mosaic_0001>
module attributes {stable_mosaic.version = 11 : i64} {
  func.func @ptmodel_kernel(%arg0: i32, %arg1: memref<8x24xf32, #tpu.memory_space<vmem>>, %arg2: memref<24x256xf32, #tpu.memory_space<vmem>>, %arg3: memref<3x256x256xf32, #tpu.memory_space<vmem>>, %arg4: memref<256x128xf32, #tpu.memory_space<vmem>>, %arg5: memref<4x256xf32, #tpu.memory_space<vmem>>, %arg6: memref<3x128xf32, #tpu.memory_space<vmem>>, %arg7: memref<8x128xf32, #tpu.memory_space<vmem>>) attributes {dimension_semantics = [#tpu.dimension_semantics<parallel>], iteration_bounds = array<i64: 1>, scalar_prefetch = 0 : i64, scratch_operands = 0 : i64, tpu.core_type = #tpu.core_type<tc>, window_params = [{transform_indices = @transform_0, window_bounds = array<i64: 8, 24>}, {pipeline_mode = #tpu.pipeline_mode<synchronous>, transform_indices = @transform_1, window_bounds = array<i64: 24, 256>}, {pipeline_mode = #tpu.pipeline_mode<synchronous>, transform_indices = @transform_2, window_bounds = array<i64: 3, 256, 256>}, {pipeline_mode = #tpu.pipeline_mode<synchronous>, transform_indices = @transform_3, window_bounds = array<i64: 256, 128>}, {pipeline_mode = #tpu.pipeline_mode<synchronous>, transform_indices = @transform_4, window_bounds = array<i64: 4, 256>}, {pipeline_mode = #tpu.pipeline_mode<synchronous>, transform_indices = @transform_5, window_bounds = array<i64: 3, 128>}, {transform_indices = @transform_6, window_bounds = array<i64: 8, 128>}]} {
    %c0 = arith.constant 0 : index
    %c0_0 = arith.constant 0 : index
    %0 = vector.load %arg1[%c0, %c0_0] : memref<8x24xf32, #tpu.memory_space<vmem>>, vector<8x24xf32>
    %c0_1 = arith.constant 0 : index
    %c0_2 = arith.constant 0 : index
    %1 = vector.load %arg2[%c0_1, %c0_2] : memref<24x256xf32, #tpu.memory_space<vmem>>, vector<24x256xf32>
    %cst = arith.constant dense<0.000000e+00> : vector<8x256xf32>
    %2 = tpu.matmul %0, %1, %cst {dimension_numbers = #tpu.dot_dimension_numbers<[1], [0], [0], [1], [0, 0, 1, 1], [], []>} : vector<8x24xf32>, vector<24x256xf32>, vector<8x256xf32> -> vector<8x256xf32>
    %c0_3 = arith.constant 0 : index
    %c0_4 = arith.constant 0 : index
    %3 = vector.load %arg5[%c0_3, %c0_4] : memref<4x256xf32, #tpu.memory_space<vmem>>, vector<1x256xf32>
    %4 = vector.broadcast %3 : vector<1x256xf32> to vector<8x256xf32>
    %5 = arith.addf %2, %4 : vector<8x256xf32>
    %6 = arith.negf %5 : vector<8x256xf32>
    %7 = math.exp %6 : vector<8x256xf32>
    %cst_5 = arith.constant 1.000000e+00 : f32
    %8 = vector.broadcast %cst_5 : f32 to vector<8x256xf32>
    %9 = arith.addf %8, %7 : vector<8x256xf32>
    %10 = arith.divf %8, %9 : vector<8x256xf32>
    %11 = arith.mulf %5, %10 : vector<8x256xf32>
    %c0_6 = arith.constant 0 : index
    %c0_7 = arith.constant 0 : index
    %c0_8 = arith.constant 0 : index
    %12 = vector.load %arg3[%c0_6, %c0_7, %c0_8] : memref<3x256x256xf32, #tpu.memory_space<vmem>>, vector<1x256x256xf32>
    %13 = vector.shape_cast %12 : vector<1x256x256xf32> to vector<256x256xf32>
    %cst_9 = arith.constant dense<0.000000e+00> : vector<8x256xf32>
    %14 = tpu.matmul %11, %13, %cst_9 {dimension_numbers = #tpu.dot_dimension_numbers<[1], [0], [0], [1], [0, 0, 1, 1], [], []>} : vector<8x256xf32>, vector<256x256xf32>, vector<8x256xf32> -> vector<8x256xf32>
    %c1 = arith.constant 1 : index
    %c0_10 = arith.constant 0 : index
    %15 = vector.load %arg5[%c1, %c0_10] : memref<4x256xf32, #tpu.memory_space<vmem>>, vector<1x256xf32>
    %16 = vector.broadcast %15 : vector<1x256xf32> to vector<8x256xf32>
    %17 = arith.addf %14, %16 : vector<8x256xf32>
    %18 = arith.negf %17 : vector<8x256xf32>
    %19 = math.exp %18 : vector<8x256xf32>
    %cst_11 = arith.constant 1.000000e+00 : f32
    %20 = vector.broadcast %cst_11 : f32 to vector<8x256xf32>
    %21 = arith.addf %20, %19 : vector<8x256xf32>
    %22 = arith.divf %20, %21 : vector<8x256xf32>
    %23 = arith.mulf %17, %22 : vector<8x256xf32>
    %c1_12 = arith.constant 1 : index
    %c0_13 = arith.constant 0 : index
    %c0_14 = arith.constant 0 : index
    %24 = vector.load %arg3[%c1_12, %c0_13, %c0_14] : memref<3x256x256xf32, #tpu.memory_space<vmem>>, vector<1x256x256xf32>
    %25 = vector.shape_cast %24 : vector<1x256x256xf32> to vector<256x256xf32>
    %cst_15 = arith.constant dense<0.000000e+00> : vector<8x256xf32>
    %26 = tpu.matmul %23, %25, %cst_15 {dimension_numbers = #tpu.dot_dimension_numbers<[1], [0], [0], [1], [0, 0, 1, 1], [], []>} : vector<8x256xf32>, vector<256x256xf32>, vector<8x256xf32> -> vector<8x256xf32>
    %c2 = arith.constant 2 : index
    %c0_16 = arith.constant 0 : index
    %27 = vector.load %arg5[%c2, %c0_16] : memref<4x256xf32, #tpu.memory_space<vmem>>, vector<1x256xf32>
    %28 = vector.broadcast %27 : vector<1x256xf32> to vector<8x256xf32>
    %29 = arith.addf %26, %28 : vector<8x256xf32>
    %30 = arith.negf %29 : vector<8x256xf32>
    %31 = math.exp %30 : vector<8x256xf32>
    %cst_17 = arith.constant 1.000000e+00 : f32
    %32 = vector.broadcast %cst_17 : f32 to vector<8x256xf32>
    %33 = arith.addf %32, %31 : vector<8x256xf32>
    %34 = arith.divf %32, %33 : vector<8x256xf32>
    %35 = arith.mulf %29, %34 : vector<8x256xf32>
    %c2_18 = arith.constant 2 : index
    %c0_19 = arith.constant 0 : index
    %c0_20 = arith.constant 0 : index
    %36 = vector.load %arg3[%c2_18, %c0_19, %c0_20] : memref<3x256x256xf32, #tpu.memory_space<vmem>>, vector<1x256x256xf32>
    %37 = vector.shape_cast %36 : vector<1x256x256xf32> to vector<256x256xf32>
    %cst_21 = arith.constant dense<0.000000e+00> : vector<8x256xf32>
    %38 = tpu.matmul %35, %37, %cst_21 {dimension_numbers = #tpu.dot_dimension_numbers<[1], [0], [0], [1], [0, 0, 1, 1], [], []>} : vector<8x256xf32>, vector<256x256xf32>, vector<8x256xf32> -> vector<8x256xf32>
    %c3 = arith.constant 3 : index
    %c0_22 = arith.constant 0 : index
    %39 = vector.load %arg5[%c3, %c0_22] : memref<4x256xf32, #tpu.memory_space<vmem>>, vector<1x256xf32>
    %40 = vector.broadcast %39 : vector<1x256xf32> to vector<8x256xf32>
    %41 = arith.addf %38, %40 : vector<8x256xf32>
    %42 = arith.negf %41 : vector<8x256xf32>
    %43 = math.exp %42 : vector<8x256xf32>
    %cst_23 = arith.constant 1.000000e+00 : f32
    %44 = vector.broadcast %cst_23 : f32 to vector<8x256xf32>
    %45 = arith.addf %44, %43 : vector<8x256xf32>
    %46 = arith.divf %44, %45 : vector<8x256xf32>
    %47 = arith.mulf %41, %46 : vector<8x256xf32>
    %c0_24 = arith.constant 0 : index
    %c0_25 = arith.constant 0 : index
    %48 = vector.load %arg4[%c0_24, %c0_25] : memref<256x128xf32, #tpu.memory_space<vmem>>, vector<256x128xf32>
    %cst_26 = arith.constant dense<0.000000e+00> : vector<8x128xf32>
    %49 = tpu.matmul %47, %48, %cst_26 {dimension_numbers = #tpu.dot_dimension_numbers<[1], [0], [0], [1], [0, 0, 1, 1], [], []>} : vector<8x256xf32>, vector<256x128xf32>, vector<8x128xf32> -> vector<8x128xf32>
    %c0_27 = arith.constant 0 : index
    %c0_28 = arith.constant 0 : index
    %50 = vector.load %arg6[%c0_27, %c0_28] : memref<3x128xf32, #tpu.memory_space<vmem>>, vector<1x128xf32>
    %51 = vector.broadcast %50 : vector<1x128xf32> to vector<8x128xf32>
    %52 = arith.addf %49, %51 : vector<8x128xf32>
    %c1_29 = arith.constant 1 : index
    %c0_30 = arith.constant 0 : index
    %53 = vector.load %arg6[%c1_29, %c0_30] : memref<3x128xf32, #tpu.memory_space<vmem>>, vector<1x128xf32>
    %c2_31 = arith.constant 2 : index
    %c0_32 = arith.constant 0 : index
    %54 = vector.load %arg6[%c2_31, %c0_32] : memref<3x128xf32, #tpu.memory_space<vmem>>, vector<1x128xf32>
    %55 = vector.broadcast %53 : vector<1x128xf32> to vector<8x128xf32>
    %56 = arith.subf %55, %52 : vector<8x128xf32>
    %cst_33 = arith.constant 0.000000e+00 : f32
    %57 = vector.broadcast %cst_33 : f32 to vector<8x128xf32>
    %58 = arith.maximumf %56, %57 : vector<8x128xf32>
    %59 = math.absf %56 : vector<8x128xf32>
    %cst_34 = arith.constant 0.000000e+00 : f32
    %60 = vector.broadcast %cst_34 : f32 to vector<8x128xf32>
    %61 = arith.subf %60, %59 : vector<8x128xf32>
    %62 = math.exp %61 : vector<8x128xf32>
    %63 = math.log1p %62 : vector<8x128xf32>
    %64 = arith.addf %58, %63 : vector<8x128xf32>
    %65 = vector.broadcast %53 : vector<1x128xf32> to vector<8x128xf32>
    %66 = arith.subf %65, %64 : vector<8x128xf32>
    %67 = vector.broadcast %54 : vector<1x128xf32> to vector<8x128xf32>
    %68 = arith.subf %66, %67 : vector<8x128xf32>
    %cst_35 = arith.constant 0.000000e+00 : f32
    %69 = vector.broadcast %cst_35 : f32 to vector<8x128xf32>
    %70 = arith.maximumf %68, %69 : vector<8x128xf32>
    %71 = math.absf %68 : vector<8x128xf32>
    %cst_36 = arith.constant 0.000000e+00 : f32
    %72 = vector.broadcast %cst_36 : f32 to vector<8x128xf32>
    %73 = arith.subf %72, %71 : vector<8x128xf32>
    %74 = math.exp %73 : vector<8x128xf32>
    %75 = math.log1p %74 : vector<8x128xf32>
    %76 = arith.addf %70, %75 : vector<8x128xf32>
    %77 = vector.broadcast %54 : vector<1x128xf32> to vector<8x128xf32>
    %78 = arith.addf %77, %76 : vector<8x128xf32>
    %79 = tpu.iota {dimensions = array<i32: 1>} : vector<8x128xi32>
    %c64_i32 = arith.constant 64 : i32
    %80 = vector.broadcast %c64_i32 : i32 to vector<8x128xi32>
    %81 = arith.cmpi sge, %79, %80 : vector<8x128xi32>
    %82 = math.exp %78 : vector<8x128xf32>
    %83 = arith.select %81, %82, %52 : vector<8x128xi1>, vector<8x128xf32>
    %c0_37 = arith.constant 0 : index
    %c0_38 = arith.constant 0 : index
    %84 = vector.load %arg7[%c0_37, %c0_38] : memref<8x128xf32, #tpu.memory_space<vmem>>, vector<8x128xf32>
    tpu.vector_store %arg7[%c0_37, %c0_38], %83 {strides = array<i32>} : memref<8x128xf32, #tpu.memory_space<vmem>>, vector<8x128xf32>,
    return
  }
  func.func @transform_0(%arg0: i32) -> (i32, i32) {
    %c0_i32 = arith.constant 0 : i32
    %c0_i32_0 = arith.constant 0 : i32
    return %arg0, %c0_i32 : i32, i32
  }
  func.func @transform_1(%arg0: i32) -> (i32, i32) {
    %c0_i32 = arith.constant 0 : i32
    %c0_i32_0 = arith.constant 0 : i32
    %c0_i32_1 = arith.constant 0 : i32
    return %c0_i32, %c0_i32_0 : i32, i32
  }
  func.func @transform_2(%arg0: i32) -> (i32, i32, i32) {
    %c0_i32 = arith.constant 0 : i32
    %c0_i32_0 = arith.constant 0 : i32
    %c0_i32_1 = arith.constant 0 : i32
    %c0_i32_2 = arith.constant 0 : i32
    return %c0_i32, %c0_i32_0, %c0_i32_1 : i32, i32, i32
  }
  func.func @transform_3(%arg0: i32) -> (i32, i32) {
    %c0_i32 = arith.constant 0 : i32
    %c0_i32_0 = arith.constant 0 : i32
    %c0_i32_1 = arith.constant 0 : i32
    return %c0_i32, %c0_i32_0 : i32, i32
  }
  func.func @transform_4(%arg0: i32) -> (i32, i32) {
    %c0_i32 = arith.constant 0 : i32
    %c0_i32_0 = arith.constant 0 : i32
    %c0_i32_1 = arith.constant 0 : i32
    return %c0_i32, %c0_i32_0 : i32, i32
  }
  func.func @transform_5(%arg0: i32) -> (i32, i32) {
    %c0_i32 = arith.constant 0 : i32
    %c0_i32_0 = arith.constant 0 : i32
    %c0_i32_1 = arith.constant 0 : i32
    return %c0_i32, %c0_i32_0 : i32, i32
  }
  func.func @transform_6(%arg0: i32) -> (i32, i32) {
    %c0_i32 = arith.constant 0 : i32
    %c0_i32_0 = arith.constant 0 : i32
    return %arg0, %c0_i32 : i32, i32
  }
}

</mosaic_0001>

<bundles_post_ra>
// kernel: tpu_custom_call.1
= control target key start
LH: loop header
LB: loop body
LE: loop exit
PB: predicated region body
PF: predicated region fallthrough
CT: control target
= control target key end

     0   :  { %11 = vsyncpa [#allocation3], 0  ;;  %s1442_s0 = inlined_call_operand.hbm [shape: f32[8,24], index: 0, kind: input, shape index: {}]   ;;  %s1443_s1 = inlined_call_operand.hbm [shape: f32[24,256], index: 1, kind: input, shape index: {}]   ;;  %s1444_s2 = inlined_call_operand.hbm [shape: f32[3,256,256], index: 2, kind: input, shape index: {}]   ;;  %s1445_s3 = inlined_call_operand.hbm [shape: f32[256,128], index: 3, kind: input, shape index: {}]   ;;  %s1446_s4 = inlined_call_operand.vmem [shape: f32[4,256], index: 4, kind: input, shape index: {}]   ;;  %s1447_s5 = inlined_call_operand.vmem [shape: f32[3,128], index: 5, kind: input, shape index: {}]   ;;  %s1448_s6 = inlined_call_operand.hbm [shape: f32[8,128], index: 6, kind: output, shape index: {}]  }
   0x1   :  { %12 = vsyncpa [#allocation6], 0 }
   0x2   :  { %13 = vsyncpa [#allocation9], 0 }
   0x3   :  { %14 = vsyncpa [#allocation4], 0  ;;  %s1296_s21 = smov [#allocation5]   ;;  %s1178_s25 = scalar_lea.hbm %s1443_s1, 768 }
   0x4   :  { %s30_s22 = sshll.u32 %s1296_s21, 4  ;;  %p1179_p0 = scmp.ne.s32.totalorder %s1443_s1, %s1178_s25  ;;  %s31_s22 = int_to_ptr.vmem [resolvable:$true] %s30_s22 }
   0x5   :  { %p1182_p1 = scmp.lt.u32.totalorder %s1178_s25, %s1443_s1 }
   0x7   :  { %p1184_p2 = pnand %p1182_p1, %p1179_p0 }
   0x9   :  { %1187 = shalt.err (!%p1184_p2)
}
   0xa   :  { %s1188_s30 = scalar_lea.vmem %s31_s22, 768  ;;  %p1193_p4 = scmp.lt.s32.totalorder %s31_s22, %s31_s22 }
   0xb   :  { %p1189_p3 = scmp.ne.s32.totalorder %s31_s22, %s1188_s30  ;;  %p1194_p5 = scmp.lt.s32.totalorder %s1188_s30, %s1188_s30 }
   0xd   :  { %p1195_p6 = por %p1194_p5, %p1193_p4 }
   0xf   :  { %p1196_p7 = pnand %p1195_p6, %p1189_p3 }
  0x11   :  { %1199 = shalt.err (!%p1196_p7)
}
  0x12   :  { %s1297_s7 = smov 256   ;;  %s1298_s8 = smov 16  }
  0x13   :  { %36 = dma.hbm_to_vmem [thread:$0]  %s1443_s1, 768, %s31_s22, [#allocation6], %s1297_s7, %s1297_s7, %s1298_s8  }
  0x14   :  { %s1299_s11 = smov [#allocation2]   ;;  %s1300_s13 = smov [#allocation7]  }
  0x15   :  { %s21_s12 = sshll.u32 %s1299_s11, 4  ;;  %s42_s14 = sshll.u32 %s1300_s13, 4  ;;  %s22_s12 = int_to_ptr.vmem [resolvable:$true] %s21_s12  ;;  %s43_s14 = int_to_ptr.vmem [resolvable:$true] %s42_s14 }
  0x16   :  { %s1200_s17 = scalar_lea.hbm %s1442_s0, 128 }
  0x17   :  { %p1201_p8 = scmp.ne.s32.totalorder %s1442_s0, %s1200_s17  ;;  %p1204_p9 = scmp.lt.u32.totalorder %s1200_s17, %s1442_s0 }
  0x19   :  { %p1206_p10 = pnand %p1204_p9, %p1201_p8 }
  0x1b   :  { %1209 = shalt.err (!%p1206_p10)
}
  0x1c   :  { %s1210_s1 = scalar_lea.vmem %s22_s12, 128  ;;  %p1215_p12 = scmp.lt.s32.totalorder %s22_s12, %s22_s12 }
  0x1d   :  { %p1211_p11 = scmp.ne.s32.totalorder %s22_s12, %s1210_s1  ;;  %p1216_p13 = scmp.lt.s32.totalorder %s1210_s1, %s1210_s1 }
  0x1f   :  { %p1217_p0 = por %p1216_p13, %p1215_p12 }
  0x21   :  { %p1218_p1 = pnand %p1217_p0, %p1211_p11 }
  0x23   :  { %1221 = shalt.err (!%p1218_p1)
}
  0x24   :  { %24 = dma.hbm_to_vmem [thread:$0]  %s1442_s0, 128, %s22_s12, [#allocation3]  }
  0x25   :  { %s1222_s26 = scalar_lea.hbm %s1444_s2, 24576 }
  0x26   :  { %p1223_p2 = scmp.ne.s32.totalorder %s1444_s2, %s1222_s26  ;;  %p1226_p3 = scmp.lt.u32.totalorder %s1222_s26, %s1444_s2 }
  0x28   :  { %p1228_p4 = pnand %p1226_p3, %p1223_p2 }
  0x2a   :  { %1231 = shalt.err (!%p1228_p4)
}
  0x2b   :  { %s1232_s9 = scalar_lea.vmem %s43_s14, 24576  ;;  %p1237_p6 = scmp.lt.s32.totalorder %s43_s14, %s43_s14 }
  0x2c   :  { %p1233_p5 = scmp.ne.s32.totalorder %s43_s14, %s1232_s9  ;;  %p1238_p7 = scmp.lt.s32.totalorder %s1232_s9, %s1232_s9 }
  0x2e   :  { %p1239_p8 = por %p1238_p7, %p1237_p6 }
  0x30   :  { %p1240_p9 = pnand %p1239_p8, %p1233_p5 }
  0x32   :  { %1243 = shalt.err (!%p1240_p9)
}
  0x33   :  { %48 = dma.hbm_to_vmem [thread:$0]  %s1444_s2, 24576, %s43_s14, [#allocation6], %s1297_s7, %s1297_s7, %s1298_s8  }
  0x34   :  { %s1301_s11 = smov [#allocation8]   ;;  %s1244_s16 = scalar_lea.hbm %s1445_s3, 4096 }
  0x35   :  { %s54_s12 = sshll.u32 %s1301_s11, 4  ;;  %p1245_p10 = scmp.ne.s32.totalorder %s1445_s3, %s1244_s16  ;;  %s55_s12 = int_to_ptr.vmem [resolvable:$true] %s54_s12 }
  0x36   :  { %p1248_p11 = scmp.lt.u32.totalorder %s1244_s16, %s1445_s3 }
  0x38   :  { %p1250_p12 = pnand %p1248_p11, %p1245_p10 }
  0x3a   :  { %1253 = shalt.err (!%p1250_p12)
}
  0x3b   :  { %s1254_s21 = scalar_lea.vmem %s55_s12, 4096  ;;  %p1259_p0 = scmp.lt.s32.totalorder %s55_s12, %s55_s12 }
  0x3c   :  { %p1255_p13 = scmp.ne.s32.totalorder %s55_s12, %s1254_s21  ;;  %p1260_p1 = scmp.lt.s32.totalorder %s1254_s21, %s1254_s21 }
  0x3e   :  { %p1261_p2 = por %p1260_p1, %p1259_p0 }
  0x40   :  { %p1262_p3 = pnand %p1261_p2, %p1255_p13 }
  0x42   :  { %1265 = shalt.err (!%p1262_p3)
}
  0x43   :  { %s1302_s2 = smov 128   ;;  %s1303_s7 = smov 8  }
  0x44   :  { %60 = dma.hbm_to_vmem [thread:$0]  %s1445_s3, 4096, %s55_s12, [#allocation9], %s1302_s2, %s1302_s2, %s1303_s7  }
  0x45   :  { %1288 = dma.done.wait [#allocation3], 128  }
  0x46   :  { %1289 = vsyncadd [#allocation3], 4294967168 }
  0x47   :  { %1290 = dma.done.wait [#allocation6], 25344  }
  0x48   :  { %1291 = vsyncadd [#allocation6], 4294941952 }
  0x49   :  { %1292 = dma.done.wait [#allocation9], 4096  }
  0x4a   :  { %1293 = vsyncadd [#allocation9], 4294963200  ;;  %v1304_v0 = vmov 0.0   ;;  %v79_v1 = vld [vmem:[#allocation5 + $0x8] sm:$0xff]  ;;  %v81_v2 = vld [vmem:[#allocation5 + $0x18] sm:$0xff]  ;;  %vm96_vm0 = vcmask 195584  }
  0x4b   :  { %164 = vmatprep.mubr.f32.mxu0 %v1304_v0  ;;  %v78_v3 = vld [vmem:[#allocation5] sm:$0xff]  ;;  %v898_v4 = vpack.c.bf16 %v81_v2, %v79_v1  ;;  %v80_v5 = vld [vmem:[#allocation5 + $0x10] sm:$0xff]  ;;  %v83_v7 = vld [vmem:[#allocation5 + $0x28] sm:$0xff] }
  0x4c   :  { %v900_v6 = vpack.c.bf16 %v80_v5, %v78_v3  ;;  %v186_v8 = vld [vmem:[#allocation7 + $0x8] sm:$0xff]  ;;  %v188_v9 = vld [vmem:[#allocation7 + $0x18] sm:$0xff]  ;;  %v185_v11 = vld [vmem:[#allocation7] sm:$0xff] }
  0x4d   :  { %899 = vmatprep.subr.bf16.mxu0 %v898_v4  ;;  %v902_v10 = vpack.c.bf16 %v188_v9, %v186_v8  ;;  %v187_v12 = vld [vmem:[#allocation7 + $0x10] sm:$0xff]  ;;  %v190_v13 = vld [vmem:[#allocation7 + $0x28] sm:$0xff]  ;;  %v192_v15 = vld [vmem:[#allocation7 + $0x38] sm:$0xff] }
  0x4e   :  { %901 = vmatpush1.bf16.msra.mxu0 %v900_v6  ;;  %v904_v14 = vpack.c.bf16 %v187_v12, %v185_v11  ;;  %v189_v16 = vld [vmem:[#allocation7 + $0x20] sm:$0xff]  ;;  %v191_v17 = vld [vmem:[#allocation7 + $0x30] sm:$0xff]  ;;  %v906_v19 = vpack.c.bf16 %v192_v15, %v190_v13  ;;  %v194_v20 = vld [vmem:[#allocation7 + $0x48] sm:$0xff] }
  0x4f   :  { %104 = vmatprep.subr.mxu0 %v83_v7  ;;  %v82_v18 = vld [vmem:[#allocation5 + $0x20] sm:$0xff]  ;;  %903 = vmatprep.subr.bf16.mxu1 %v902_v10  ;;  %v196_v21 = vld [vmem:[#allocation7 + $0x58] sm:$0xff]  ;;  %v77_v22 = vld [vmem:[#allocation2] sm:$0xff]  ;;  %v908_v23 = vpack.c.bf16 %v191_v17, %v189_v16 }
  0x50   :  { %905 = vmatpush1.bf16.msra.mxu1 %v904_v14  ;;  %v910_v24 = vpack.c.bf16 %v196_v21, %v194_v20  ;;  %v193_v25 = vld [vmem:[#allocation7 + $0x40] sm:$0xff]  ;;  %v195_v26 = vld [vmem:[#allocation7 + $0x50] sm:$0xff]  ;;  %v198_v27 = vld [vmem:[#allocation7 + $0x68] sm:$0xff] }
  0x51   :  { %907 = vmatprep.subr.bf16.mxu1 %v906_v19  ;;  %v200_v28 = vld [vmem:[#allocation7 + $0x78] sm:$0xff]  ;;  %v912_v29 = vpack.c.bf16 %v195_v26, %v193_v25  ;;  %v197_v31 = vld [vmem:[#allocation7 + $0x60] sm:$0xff]  ;;  %v199_v32 = vld [vmem:[#allocation7 + $0x70] sm:$0xff] }
  0x52   :  { %105 = vmatpush1.msra.mxu0 %v82_v18  ;;  %v914_v30 = vpack.c.bf16 %v200_v28, %v198_v27  ;;  %v202_v33 = vld [vmem:[#allocation7 + $0x88] sm:$0xff]  ;;  %v204_v34 = vld [vmem:[#allocation7 + $0x98] sm:$0xff]  ;;  %v916_v35 = vpack.c.bf16 %v199_v32, %v197_v31  ;;  %v201_v37 = vld [vmem:[#allocation7 + $0x80] sm:$0xff] }
  0x53   :  { %848 = vmatmul.mubr.msk.f32.vlgmr.msra.gmra.mrb[0].mxu0 %vm96_vm0, %v77_v22  ;;  %v918_v36 = vpack.c.bf16 %v204_v34, %v202_v33  ;;  %v203_v38 = vld [vmem:[#allocation7 + $0x90] sm:$0xff]  ;;  %v206_v39 = vld [vmem:[#allocation7 + $0xa8] sm:$0xff]  ;;  %v208_v40 = vld [vmem:[#allocation7 + $0xb8] sm:$0xff] }
  0x54   :  { %909 = vmatpush1.bf16.msra.mxu1 %v908_v23  ;;  %v920_v41 = vpack.c.bf16 %v203_v38, %v201_v37  ;;  %v922_v42 = vpack.c.bf16 %v208_v40, %v206_v39  ;;  %v205_v43 = vld [vmem:[#allocation7 + $0xa0] sm:$0xff]  ;;  %v207_v44 = vld [vmem:[#allocation7 + $0xb0] sm:$0xff]  ;;  %v210_v45 = vld [vmem:[#allocation7 + $0xc8] sm:$0xff] }
  0x55   :  { %911 = vmatprep.subr.bf16.mxu1 %v910_v24  ;;  %v212_v46 = vld [vmem:[#allocation7 + $0xd8] sm:$0xff]  ;;  %v924_v47 = vpack.c.bf16 %v207_v44, %v205_v43  ;;  %v209_v49 = vld [vmem:[#allocation7 + $0xc0] sm:$0xff]  ;;  %v211_v50 = vld [vmem:[#allocation7 + $0xd0] sm:$0xff] }
  0x56   :  { %v926_v48 = vpack.c.bf16 %v212_v46, %v210_v45  ;;  %v214_v51 = vld [vmem:[#allocation7 + $0xe8] sm:$0xff]  ;;  %v216_v52 = vld [vmem:[#allocation7 + $0xf8] sm:$0xff]  ;;  %v928_v53 = vpack.c.bf16 %v211_v50, %v209_v49  ;;  %v213_v55 = vld [vmem:[#allocation7 + $0xe0] sm:$0xff] }
  0x57   :  { %v930_v54 = vpack.c.bf16 %v216_v52, %v214_v51  ;;  %v215_v56 = vld [vmem:[#allocation7 + $0xf0] sm:$0xff]  ;;  %v218_v58 = vld [vmem:[#allocation7 + $0x108] sm:$0xff]  ;;  %v220_v59 = vld [vmem:[#allocation7 + $0x118] sm:$0xff] }
  0x58   :  { %913 = vmatpush1.bf16.msra.mxu1 %v912_v29  ;;  %v932_v57 = vpack.c.bf16 %v215_v56, %v213_v55  ;;  %v934_v60 = vpack.c.bf16 %v220_v59, %v218_v58  ;;  %v217_v61 = vld [vmem:[#allocation7 + $0x100] sm:$0xff]  ;;  %v219_v62 = vld [vmem:[#allocation7 + $0x110] sm:$0xff]  ;;  %v222_v0 = vld [vmem:[#allocation7 + $0x128] sm:$0xff] }
  0x59   :  { %915 = vmatprep.subr.bf16.mxu1 %v914_v30  ;;  %v936_v63 = vpack.c.bf16 %v219_v62, %v217_v61  ;;  %v224_v1 = vld [vmem:[#allocation7 + $0x138] sm:$0xff]  ;;  %v221_v3 = vld [vmem:[#allocation7 + $0x120] sm:$0xff]  ;;  %v223_v4 = vld [vmem:[#allocation7 + $0x130] sm:$0xff] }
  0x5a   :  { %v938_v2 = vpack.c.bf16 %v224_v1, %v222_v0  ;;  %v940_v5 = vpack.c.bf16 %v223_v4, %v221_v3  ;;  %v226_v6 = vld [vmem:[#allocation7 + $0x148] sm:$0xff]  ;;  %v228_v7 = vld [vmem:[#allocation7 + $0x158] sm:$0xff]  ;;  %v225_v9 = vld [vmem:[#allocation7 + $0x140] sm:$0xff] }
  0x5b   :  { %v942_v8 = vpack.c.bf16 %v228_v7, %v226_v6  ;;  %v227_v10 = vld [vmem:[#allocation7 + $0x150] sm:$0xff]  ;;  %v230_v12 = vld [vmem:[#allocation7 + $0x168] sm:$0xff]  ;;  %v232_v13 = vld [vmem:[#allocation7 + $0x178] sm:$0xff] }
  0x5c   :  { %917 = vmatpush1.bf16.msra.mxu1 %v916_v35  ;;  %v944_v11 = vpack.c.bf16 %v227_v10, %v225_v9  ;;  %v946_v14 = vpack.c.bf16 %v232_v13, %v230_v12  ;;  %v229_v15 = vld [vmem:[#allocation7 + $0x160] sm:$0xff]  ;;  %v231_v16 = vld [vmem:[#allocation7 + $0x170] sm:$0xff]  ;;  %v234_v18 = vld [vmem:[#allocation7 + $0x188] sm:$0xff] }
  0x5d   :  { %919 = vmatprep.subr.bf16.mxu1 %v918_v36  ;;  %v948_v17 = vpack.c.bf16 %v231_v16, %v229_v15  ;;  %v236_v19 = vld [vmem:[#allocation7 + $0x198] sm:$0xff]  ;;  %v233_v21 = vld [vmem:[#allocation7 + $0x180] sm:$0xff]  ;;  %v235_v22 = vld [vmem:[#allocation7 + $0x190] sm:$0xff] }
  0x5e   :  { %v950_v20 = vpack.c.bf16 %v236_v19, %v234_v18  ;;  %v952_v23 = vpack.c.bf16 %v235_v22, %v233_v21  ;;  %v238_v24 = vld [vmem:[#allocation7 + $0x1a8] sm:$0xff]  ;;  %v240_v25 = vld [vmem:[#allocation7 + $0x1b8] sm:$0xff]  ;;  %v237_v27 = vld [vmem:[#allocation7 + $0x1a0] sm:$0xff] }
  0x5f   :  { %v954_v26 = vpack.c.bf16 %v240_v25, %v238_v24  ;;  %v239_v28 = vld [vmem:[#allocation7 + $0x1b0] sm:$0xff]  ;;  %v242_v30 = vld [vmem:[#allocation7 + $0x1c8] sm:$0xff]  ;;  %v244_v31 = vld [vmem:[#allocation7 + $0x1d8] sm:$0xff] }
  0x60   :  { %921 = vmatpush1.bf16.msra.mxu1 %v920_v41  ;;  %v956_v29 = vpack.c.bf16 %v239_v28, %v237_v27  ;;  %v958_v32 = vpack.c.bf16 %v244_v31, %v242_v30  ;;  %v241_v33 = vld [vmem:[#allocation7 + $0x1c0] sm:$0xff]  ;;  %v243_v34 = vld [vmem:[#allocation7 + $0x1d0] sm:$0xff]  ;;  %v246_v36 = vld [vmem:[#allocation7 + $0x1e8] sm:$0xff] }
  0x61   :  { %923 = vmatprep.subr.bf16.mxu1 %v922_v42  ;;  %v960_v35 = vpack.c.bf16 %v243_v34, %v241_v33  ;;  %v248_v37 = vld [vmem:[#allocation7 + $0x1f8] sm:$0xff]  ;;  %v245_v39 = vld [vmem:[#allocation7 + $0x1e0] sm:$0xff]  ;;  %v247_v40 = vld [vmem:[#allocation7 + $0x1f0] sm:$0xff] }
  0x62   :  { %v962_v38 = vpack.c.bf16 %v248_v37, %v246_v36  ;;  %v964_v41 = vpack.c.bf16 %v247_v40, %v245_v39  ;;  %v349_v42 = vld [vmem:[#allocation7 + $0x208] sm:$0xff]  ;;  %v351_v43 = vld [vmem:[#allocation7 + $0x218] sm:$0xff]  ;;  %v348_v44 = vld [vmem:[#allocation7 + $0x200] sm:$0xff] }
  0x63   :  { %v966_v45 = vpack.c.bf16 %v351_v43, %v349_v42  ;;  %v350_v46 = vld [vmem:[#allocation7 + $0x210] sm:$0xff]  ;;  %v352_v51 = vld [vmem:[#allocation7 + $0x220] sm:$0xff]  ;;  %v361_v59 = vld [vmem:[#allocation7 + $0x268] sm:$0xff] }
  0x64   :  { %925 = vmatpush1.bf16.msra.mxu1 %v924_v47  ;;  %v353_v47 = vld [vmem:[#allocation7 + $0x228] sm:$0xff]  ;;  %v968_v49 = vpack.c.bf16 %v350_v46, %v348_v44  ;;  %v354_v52 = vld [vmem:[#allocation7 + $0x230] sm:$0xff] }
  0x65   :  { %927 = vmatprep.subr.bf16.mxu1 %v926_v48  ;;  %v355_v48 = vld [vmem:[#allocation7 + $0x238] sm:$0xff]  ;;  %967 = vmatprep.subr.bf16.mxu0 %v966_v45  ;;  %v972_v55 = vpack.c.bf16 %v354_v52, %v352_v51  ;;  %v358_v58 = vld [vmem:[#allocation7 + $0x250] sm:$0xff]  ;;  %v365_v1 = vld [vmem:[#allocation7 + $0x288] sm:$0xff] }
  0x66   :  { %v970_v50 = vpack.c.bf16 %v355_v48, %v353_v47  ;;  %969 = vmatpush1.bf16.msra.mxu0 %v968_v49  ;;  %v362_v0 = vld [vmem:[#allocation7 + $0x270] sm:$0xff]  ;;  %v369_v7 = vld [vmem:[#allocation7 + $0x2a8] sm:$0xff]  ;;  %v383_v48 = vld [vmem:[#allocation7 + $0x318] sm:$0xff] }
  0x67   :  { %v366_v6 = vld [vmem:[#allocation7 + $0x290] sm:$0xff]  ;;  %v373_v13 = vld [vmem:[#allocation7 + $0x2c8] sm:$0xff] }
  0x68   :  { %929 = vmatpush1.bf16.msra.mxu1 %v928_v53  ;;  %v357_v53 = vld [vmem:[#allocation7 + $0x248] sm:$0xff]  ;;  %971 = vmatprep.subr.bf16.mxu0 %v970_v50  ;;  %v370_v12 = vld [vmem:[#allocation7 + $0x2b0] sm:$0xff]  ;;  %v380_v50 = vld [vmem:[#allocation7 + $0x300] sm:$0xff] }
  0x69   :  { %931 = vmatprep.subr.bf16.mxu1 %v930_v54  ;;  %v359_v54 = vld [vmem:[#allocation7 + $0x258] sm:$0xff]  ;;  %v374_v18 = vld [vmem:[#allocation7 + $0x2d0] sm:$0xff]  ;;  %v377_v19 = vld [vmem:[#allocation7 + $0x2e8] sm:$0xff] }
  0x6a   :  { %v974_v56 = vpack.c.bf16 %v359_v54, %v357_v53  ;;  %973 = vmatpush1.bf16.msra.mxu0 %v972_v55  ;;  %v378_v24 = vld [vmem:[#allocation7 + $0x2f0] sm:$0xff]  ;;  %v381_v47 = vld [vmem:[#allocation7 + $0x308] sm:$0xff]  ;;  %v387_v54 = vld [vmem:[#allocation7 + $0x338] sm:$0xff] }
  0x6b   :  { %v998_v49 = vpack.c.bf16 %v383_v48, %v381_v47  ;;  %v382_v51 = vld [vmem:[#allocation7 + $0x310] sm:$0xff]  ;;  %v385_v53 = vld [vmem:[#allocation7 + $0x328] sm:$0xff] }
  0x6c   :  { %933 = vmatpush1.bf16.msra.mxu1 %v932_v57  ;;  %v356_v57 = vld [vmem:[#allocation7 + $0x240] sm:$0xff]  ;;  %975 = vmatprep.subr.bf16.mxu0 %v974_v56  ;;  %v1000_v52 = vpack.c.bf16 %v382_v51, %v380_v50  ;;  %v1002_v55 = vpack.c.bf16 %v387_v54, %v385_v53  ;;  %v521_v50 = vld [vmem:[#allocation7 + $0x450] sm:$0xff]  ;;  %v524_v51 = vld [vmem:[#allocation7 + $0x468] sm:$0xff] }
  0x6d   :  { %935 = vmatprep.subr.bf16.mxu1 %v934_v60  ;;  %v363_v60 = vld [vmem:[#allocation7 + $0x278] sm:$0xff]  ;;  %v976_v61 = vpack.c.bf16 %v358_v58, %v356_v57  ;;  %v384_v56 = vld [vmem:[#allocation7 + $0x320] sm:$0xff]  ;;  %v386_v57 = vld [vmem:[#allocation7 + $0x330] sm:$0xff] }
  0x6e   :  { %v978_v62 = vpack.c.bf16 %v363_v60, %v361_v59  ;;  %v1004_v58 = vpack.c.bf16 %v386_v57, %v384_v56  ;;  %v389_v59 = vld [vmem:[#allocation7 + $0x348] sm:$0xff]  ;;  %v391_v60 = vld [vmem:[#allocation7 + $0x358] sm:$0xff]  ;;  %v525_v56 = vld [vmem:[#allocation7 + $0x470] sm:$0xff] }
  0x6f   :  { %977 = vmatpush1.bf16.msra.mxu0 %v976_v61  ;;  %v1006_v61 = vpack.c.bf16 %v391_v60, %v389_v59  ;;  %v528_v57 = vld [vmem:[#allocation7 + $0x488] sm:$0xff] }
  0x70   :  { %937 = vmatpush1.bf16.msra.mxu1 %v936_v63  ;;  %v360_v63 = vld [vmem:[#allocation7 + $0x260] sm:$0xff]  ;;  %979 = vmatprep.subr.bf16.mxu0 %v978_v62 }
  0x71   :  { %939 = vmatprep.subr.bf16.mxu1 %v938_v2  ;;  %v367_v2 = vld [vmem:[#allocation7 + $0x298] sm:$0xff]  ;;  %v980_v3 = vpack.c.bf16 %v362_v0, %v360_v63  ;;  %v388_v62 = vld [vmem:[#allocation7 + $0x340] sm:$0xff]  ;;  %v390_v63 = vld [vmem:[#allocation7 + $0x350] sm:$0xff] }
  0x72   :  { %v982_v4 = vpack.c.bf16 %v367_v2, %v365_v1  ;;  %v1008_v0 = vpack.c.bf16 %v390_v63, %v388_v62  ;;  %v393_v1 = vld [vmem:[#allocation7 + $0x368] sm:$0xff]  ;;  %v395_v2 = vld [vmem:[#allocation7 + $0x378] sm:$0xff]  ;;  %v529_v62 = vld [vmem:[#allocation7 + $0x490] sm:$0xff] }
  0x73   :  { %981 = vmatpush1.bf16.msra.mxu0 %v980_v3  ;;  %v1010_v3 = vpack.c.bf16 %v395_v2, %v393_v1  ;;  %v532_v63 = vld [vmem:[#allocation7 + $0x4a8] sm:$0xff] }
  0x74   :  { %941 = vmatpush1.bf16.msra.mxu1 %v940_v5  ;;  %v364_v5 = vld [vmem:[#allocation7 + $0x280] sm:$0xff]  ;;  %983 = vmatprep.subr.bf16.mxu0 %v982_v4 }
  0x75   :  { %943 = vmatprep.subr.bf16.mxu1 %v942_v8  ;;  %v371_v8 = vld [vmem:[#allocation7 + $0x2b8] sm:$0xff]  ;;  %v984_v9 = vpack.c.bf16 %v366_v6, %v364_v5  ;;  %v392_v4 = vld [vmem:[#allocation7 + $0x360] sm:$0xff]  ;;  %v394_v5 = vld [vmem:[#allocation7 + $0x370] sm:$0xff] }
  0x76   :  { %v986_v10 = vpack.c.bf16 %v371_v8, %v369_v7  ;;  %v1012_v6 = vpack.c.bf16 %v394_v5, %v392_v4  ;;  %v397_v7 = vld [vmem:[#allocation7 + $0x388] sm:$0xff]  ;;  %v399_v8 = vld [vmem:[#allocation7 + $0x398] sm:$0xff]  ;;  %v533_v4 = vld [vmem:[#allocation7 + $0x4b0] sm:$0xff] }
  0x77   :  { %985 = vmatpush1.bf16.msra.mxu0 %v984_v9  ;;  %v1014_v9 = vpack.c.bf16 %v399_v8, %v397_v7  ;;  %v536_v5 = vld [vmem:[#allocation7 + $0x4c8] sm:$0xff] }
  0x78   :  { %945 = vmatpush1.bf16.msra.mxu1 %v944_v11  ;;  %v368_v11 = vld [vmem:[#allocation7 + $0x2a0] sm:$0xff]  ;;  %987 = vmatprep.subr.bf16.mxu0 %v986_v10 }
  0x79   :  { %947 = vmatprep.subr.bf16.mxu1 %v946_v14  ;;  %v375_v14 = vld [vmem:[#allocation7 + $0x2d8] sm:$0xff]  ;;  %v988_v15 = vpack.c.bf16 %v370_v12, %v368_v11  ;;  %v396_v10 = vld [vmem:[#allocation7 + $0x380] sm:$0xff]  ;;  %v398_v11 = vld [vmem:[#allocation7 + $0x390] sm:$0xff] }
  0x7a   :  { %v990_v16 = vpack.c.bf16 %v375_v14, %v373_v13  ;;  %v1016_v12 = vpack.c.bf16 %v398_v11, %v396_v10  ;;  %v401_v13 = vld [vmem:[#allocation7 + $0x3a8] sm:$0xff]  ;;  %v403_v14 = vld [vmem:[#allocation7 + $0x3b8] sm:$0xff]  ;;  %v537_v10 = vld [vmem:[#allocation7 + $0x4d0] sm:$0xff] }
  0x7b   :  { %989 = vmatpush1.bf16.msra.mxu0 %v988_v15  ;;  %v1018_v15 = vpack.c.bf16 %v403_v14, %v401_v13  ;;  %v540_v11 = vld [vmem:[#allocation7 + $0x4e8] sm:$0xff] }
  0x7c   :  { %949 = vmatpush1.bf16.msra.mxu1 %v948_v17  ;;  %v372_v17 = vld [vmem:[#allocation7 + $0x2c0] sm:$0xff]  ;;  %991 = vmatprep.subr.bf16.mxu0 %v990_v16 }
  0x7d   :  { %951 = vmatprep.subr.bf16.mxu1 %v950_v20  ;;  %v379_v20 = vld [vmem:[#allocation7 + $0x2f8] sm:$0xff]  ;;  %v992_v21 = vpack.c.bf16 %v374_v18, %v372_v17  ;;  %v400_v16 = vld [vmem:[#allocation7 + $0x3a0] sm:$0xff]  ;;  %v402_v17 = vld [vmem:[#allocation7 + $0x3b0] sm:$0xff] }
  0x7e   :  { %v994_v22 = vpack.c.bf16 %v379_v20, %v377_v19  ;;  %v1020_v18 = vpack.c.bf16 %v402_v17, %v400_v16  ;;  %v405_v19 = vld [vmem:[#allocation7 + $0x3c8] sm:$0xff]  ;;  %v407_v20 = vld [vmem:[#allocation7 + $0x3d8] sm:$0xff]  ;;  %v541_v16 = vld [vmem:[#allocation7 + $0x4f0] sm:$0xff] }
  0x7f   :  { %993 = vmatpush1.bf16.msra.mxu0 %v992_v21  ;;  %v1022_v21 = vpack.c.bf16 %v407_v20, %v405_v19 }
  0x80   :  { %953 = vmatpush1.bf16.msra.mxu1 %v952_v23  ;;  %v376_v23 = vld [vmem:[#allocation7 + $0x2e0] sm:$0xff]  ;;  %995 = vmatprep.subr.bf16.mxu0 %v994_v22 }
  0x81   :  { %955 = vmatprep.subr.bf16.mxu1 %v954_v26  ;;  %v996_v25 = vpack.c.bf16 %v378_v24, %v376_v23  ;;  %v86_v26 = vlaneseq  ;;  %v404_v22 = vld [vmem:[#allocation7 + $0x3c0] sm:$0xff]  ;;  %v406_v23 = vld [vmem:[#allocation7 + $0x3d0] sm:$0xff] }
  0x82   :  { %v1024_v24 = vpack.c.bf16 %v406_v23, %v404_v22 }
  0x83   :  { %997 = vmatpush1.bf16.msra.mxu0 %v996_v25  ;;  %v87_v27 = vshrl.u32 %v86_v26, 7  ;;  %v409_v25 = vld [vmem:[#allocation7 + $0x3e8] sm:$0xff] }
  0x84   :  { %957 = vmatpush1.bf16.msra.mxu1 %v956_v29  ;;  %v84_v29 = vld [vmem:[%s1446_s4] ss:$4 sm:$0x3]  ;;  %999 = vmatprep.subr.bf16.mxu0 %v998_v49  ;;  %v519_v49 = vld [vmem:[#allocation7 + $0x440] sm:$0xff] }
  0x85   :  { %959 = vmatprep.subr.bf16.mxu1 %v958_v32  ;;  %v1396_v28 = vsub.s32 0, %v87_v27  ;;  %v1401_v30 = vsub.s32 1, %v87_v27  ;;  %v411_v27 = vld [vmem:[#allocation7 + $0x3f8] sm:$0xff]  ;;  %v1040_v53 = vpack.c.bf16 %v521_v50, %v519_v49  ;;  %v552_v50 = vld [vmem:[#allocation7 + $0x548] sm:$0xff] }
  0x87   :  { %v89_v31 = vrot.slane %v84_v29, %v1396_v28  ;;  %v93_v32 = vrot.slane %v84_v29, %v1401_v30  ;;  %1001 = vmatpush1.bf16.msra.mxu0 %v1000_v52  ;;  %v1026_v29 = vpack.c.bf16 %v411_v27, %v409_v25  ;;  %v526_v52 = vld [vmem:[#allocation7 + $0x478] sm:$0xff] }
  0x88   :  { %961 = vmatpush1.bf16.msra.mxu1 %v960_v35  ;;  %1003 = vmatprep.subr.bf16.mxu0 %v1002_v55  ;;  %v1042_v54 = vpack.c.bf16 %v526_v52, %v524_v51  ;;  %v523_v55 = vld [vmem:[#allocation7 + $0x460] sm:$0xff]  ;;  %v554_v51 = vld [vmem:[#allocation7 + $0x558] sm:$0xff] }
  0x89   :  { %963 = vmatprep.subr.bf16.mxu1 %v962_v38  ;;  %v1044_v59 = vpack.c.bf16 %v525_v56, %v523_v55  ;;  %v1070_v52 = vpack.c.bf16 %v554_v51, %v552_v50  ;;  %v556_v56 = vld [vmem:[#allocation7 + $0x568] sm:$0xff]  ;;  %v675_v51 = vld [vmem:[#allocation8 + $0x10] sm:$0xff] }
  0x8b   :  { %1005 = vmatpush1.bf16.msra.mxu0 %v1004_v58  ;;  %v530_v58 = vld [vmem:[#allocation7 + $0x498] sm:$0xff] }
  0x8c   :  { %965 = vmatpush1.bf16.msra.mxu1 %v964_v41  ;;  %1007 = vmatprep.subr.bf16.mxu0 %v1006_v61  ;;  %v1046_v60 = vpack.c.bf16 %v530_v58, %v528_v57  ;;  %v527_v61 = vld [vmem:[#allocation7 + $0x480] sm:$0xff]  ;;  %v558_v57 = vld [vmem:[#allocation7 + $0x578] sm:$0xff] }
  0x8d   :  { %v1048_v1 = vpack.c.bf16 %v529_v62, %v527_v61  ;;  %v1074_v58 = vpack.c.bf16 %v558_v57, %v556_v56  ;;  %v560_v62 = vld [vmem:[#allocation7 + $0x588] sm:$0xff]  ;;  %v677_v57 = vld [vmem:[#allocation8 + $0x20] sm:$0xff] }
  0x8f   :  { %1009 = vmatpush1.bf16.msra.mxu0 %v1008_v0  ;;  %v534_v0 = vld [vmem:[#allocation7 + $0x4b8] sm:$0xff] }
  0x90   :  { %1011 = vmatprep.subr.bf16.mxu0 %v1010_v3  ;;  %v1050_v2 = vpack.c.bf16 %v534_v0, %v532_v63  ;;  %v531_v3 = vld [vmem:[#allocation7 + $0x4a0] sm:$0xff]  ;;  %v562_v63 = vld [vmem:[#allocation7 + $0x598] sm:$0xff] }
  0x91   :  { %v1052_v7 = vpack.c.bf16 %v533_v4, %v531_v3  ;;  %v1078_v0 = vpack.c.bf16 %v562_v63, %v560_v62  ;;  %v564_v4 = vld [vmem:[#allocation7 + $0x5a8] sm:$0xff]  ;;  %v679_v63 = vld [vmem:[#allocation8 + $0x30] sm:$0xff] }
  0x93   :  { %1013 = vmatpush1.bf16.msra.mxu0 %v1012_v6  ;;  %v538_v6 = vld [vmem:[#allocation7 + $0x4d8] sm:$0xff] }
  0x94   :  { %1015 = vmatprep.subr.bf16.mxu0 %v1014_v9  ;;  %v1054_v8 = vpack.c.bf16 %v538_v6, %v536_v5  ;;  %v535_v9 = vld [vmem:[#allocation7 + $0x4c0] sm:$0xff]  ;;  %v566_v5 = vld [vmem:[#allocation7 + $0x5b8] sm:$0xff] }
  0x95   :  { %v1056_v13 = vpack.c.bf16 %v537_v10, %v535_v9  ;;  %v1082_v6 = vpack.c.bf16 %v566_v5, %v564_v4  ;;  %v568_v10 = vld [vmem:[#allocation7 + $0x5c8] sm:$0xff]  ;;  %v681_v5 = vld [vmem:[#allocation8 + $0x40] sm:$0xff] }
  0x97   :  { %1017 = vmatpush1.bf16.msra.mxu0 %v1016_v12  ;;  %v542_v12 = vld [vmem:[#allocation7 + $0x4f8] sm:$0xff] }
  0x98   :  { %1019 = vmatprep.subr.bf16.mxu0 %v1018_v15  ;;  %v1058_v14 = vpack.c.bf16 %v542_v12, %v540_v11  ;;  %v539_v15 = vld [vmem:[#allocation7 + $0x4e0] sm:$0xff]  ;;  %v570_v11 = vld [vmem:[#allocation7 + $0x5d8] sm:$0xff] }
  0x99   :  { %v1060_v17 = vpack.c.bf16 %v541_v16, %v539_v15  ;;  %v1086_v12 = vpack.c.bf16 %v570_v11, %v568_v10  ;;  %v572_v16 = vld [vmem:[#allocation7 + $0x5e8] sm:$0xff]  ;;  %v683_v11 = vld [vmem:[#allocation8 + $0x50] sm:$0xff] }
  0x9b   :  { %1021 = vmatpush1.bf16.msra.mxu0 %v1020_v18  ;;  %v851_v18 = vld [vmem:[%s1446_s4 + $0x1] ss:$4 sm:$0x3] }
  0x9c   :  { %1023 = vmatprep.subr.bf16.mxu0 %v1022_v21  ;;  %v255_v19 = vrot.slane %v851_v18, %v1396_v28  ;;  %v259_v20 = vrot.slane %v851_v18, %v1401_v30 }
  0x9f   :  { %1025 = vmatpush1.bf16.msra.mxu0 %v1024_v24 }
  0xa0   :  { %1027 = vmatprep.subr.bf16.mxu0 %v1026_v29 }
 0x126   :  { %v166_v33 = vpop.f32.mrb[0].mxu0 }
 0x127   :  { %v167_v34 = vadd.f32 %v166_v33, %v89_v31  ;;  %v168_v35 = vpop.f32.mrb[1].mxu0  ;;  %v408_v31 = vld [vmem:[#allocation7 + $0x3e0] sm:$0xff] }
 0x128   :  { %v169_v36 = vadd.f32 %v168_v35, %v93_v32  ;;  %v410_v32 = vld [vmem:[#allocation7 + $0x3f0] sm:$0xff]  ;;  %v514_v35 = vld [vmem:[#allocation7 + $0x418] sm:$0xff] }
 0x129   :  { %v849_v37 = vmul.f32 -1.442695, %v167_v34  ;;  %v1028_v33 = vpack.c.bf16 %v410_v32, %v408_v31 }
 0x12a   :  { %v850_v38 = vmul.f32 -1.442695, %v169_v36 }
 0x12b   :  { %1136 = vpow2.f32 %v849_v37  ;;  %1029 = vmatpush1.bf16.msra.mxu0 %v1028_v33 }
 0x12c   :  { %1138 = vpow2.f32 %v850_v38  ;;  %v513_v38 = vld [vmem:[#allocation7 + $0x410] sm:$0xff] }
 0x135   :  { %v1137_v39 = vpop.eup %1136 }
 0x136   :  { %v1139_v40 = vpop.eup %1138  ;;  %v177_v41 = vadd.f32 1.0, %v1137_v39  ;;  %v516_v39 = vld [vmem:[#allocation7 + $0x428] sm:$0xff] }
 0x137   :  { %v178_v42 = vadd.f32 1.0, %v1139_v40  ;;  %v518_v40 = vld [vmem:[#allocation7 + $0x438] sm:$0xff] }
 0x138   :  { %1140 = vrcp.f32 %v177_v41 }
 0x139   :  { %1142 = vrcp.f32 %v178_v42  ;;  %v1034_v42 = vpack.c.bf16 %v518_v40, %v516_v39  ;;  %v546_v39 = vld [vmem:[#allocation7 + $0x518] sm:$0xff] }
 0x142   :  { %v1141_v43 = vpop.eup %1140 }
 0x143   :  { %v1143_v44 = vpop.eup %1142  ;;  %v183_v46 = vmul.f32 %v1141_v43, %v167_v34  ;;  %v512_v34 = vld [vmem:[#allocation7 + $0x408] sm:$0xff]  ;;  %v515_v43 = vld [vmem:[#allocation7 + $0x420] sm:$0xff] }
 0x144   :  { %v184_v45 = vmul.f32 %v1143_v44, %v169_v36  ;;  %v511_v36 = vld [vmem:[#allocation7 + $0x400] sm:$0xff]  ;;  %v1030_v37 = vpack.c.bf16 %v514_v35, %v512_v34  ;;  %v517_v44 = vld [vmem:[#allocation7 + $0x430] sm:$0xff] }
 0x145   :  { %v1032_v41 = vpack.c.bf16 %v513_v38, %v511_v36  ;;  %v1036_v47 = vpack.c.bf16 %v517_v44, %v515_v43  ;;  %v544_v38 = vld [vmem:[#allocation7 + $0x508] sm:$0xff] }
 0x146   :  { %326 = vmatprep.mubr.f32.mxu1 %v184_v45  ;;  %v520_v45 = vld [vmem:[#allocation7 + $0x448] sm:$0xff]  ;;  %1031 = vmatprep.subr.bf16.mxu1 %v1030_v37  ;;  %v1062_v40 = vpack.c.bf16 %v546_v39, %v544_v38 }
 0x147   :  { %327 = vmatmul.mubr.f32.vlgmr.msra.gmra.mrb[0].mxu1 %v183_v46  ;;  %v522_v46 = vld [vmem:[#allocation7 + $0x458] sm:$0xff]  ;;  %v548_v44 = vld [vmem:[#allocation7 + $0x528] sm:$0xff] }
 0x148   :  { %1033 = vmatpush1.bf16.msra.mxu1 %v1032_v41  ;;  %v1038_v48 = vpack.c.bf16 %v522_v46, %v520_v45  ;;  %v543_v41 = vld [vmem:[#allocation7 + $0x500] sm:$0xff]  ;;  %v550_v45 = vld [vmem:[#allocation7 + $0x538] sm:$0xff] }
 0x149   :  { %1035 = vmatprep.subr.bf16.mxu1 %v1034_v42  ;;  %v545_v42 = vld [vmem:[#allocation7 + $0x510] sm:$0xff]  ;;  %v1066_v46 = vpack.c.bf16 %v550_v45, %v548_v44  ;;  %v673_v45 = vld [vmem:[#allocation8] sm:$0xff] }
 0x14a   :  { %v1064_v43 = vpack.c.bf16 %v545_v42, %v543_v41  ;;  %v689_v42 = vld [vmem:[#allocation8 + $0x80] sm:$0xff] }
 0x14c   :  { %1037 = vmatpush1.bf16.msra.mxu1 %v1036_v47  ;;  %v547_v47 = vld [vmem:[#allocation7 + $0x520] sm:$0xff] }
 0x14d   :  { %1039 = vmatprep.subr.bf16.mxu1 %v1038_v48  ;;  %v549_v48 = vld [vmem:[#allocation7 + $0x530] sm:$0xff] }
 0x14e   :  { %v1068_v49 = vpack.c.bf16 %v549_v48, %v547_v47  ;;  %v691_v48 = vld [vmem:[#allocation8 + $0x90] sm:$0xff] }
 0x150   :  { %1041 = vmatpush1.bf16.msra.mxu1 %v1040_v53  ;;  %v551_v53 = vld [vmem:[#allocation7 + $0x540] sm:$0xff] }
 0x151   :  { %1043 = vmatprep.subr.bf16.mxu1 %v1042_v54  ;;  %v553_v54 = vld [vmem:[#allocation7 + $0x550] sm:$0xff] }
 0x152   :  { %v1072_v55 = vpack.c.bf16 %v553_v54, %v551_v53  ;;  %v693_v54 = vld [vmem:[#allocation8 + $0xa0] sm:$0xff] }
 0x154   :  { %1045 = vmatpush1.bf16.msra.mxu1 %v1044_v59  ;;  %v555_v59 = vld [vmem:[#allocation7 + $0x560] sm:$0xff] }
 0x155   :  { %1047 = vmatprep.subr.bf16.mxu1 %v1046_v60  ;;  %v557_v60 = vld [vmem:[#allocation7 + $0x570] sm:$0xff] }
 0x156   :  { %v1076_v61 = vpack.c.bf16 %v557_v60, %v555_v59  ;;  %v695_v60 = vld [vmem:[#allocation8 + $0xb0] sm:$0xff] }
 0x158   :  { %1049 = vmatpush1.bf16.msra.mxu1 %v1048_v1  ;;  %v559_v1 = vld [vmem:[#allocation7 + $0x580] sm:$0xff] }
 0x159   :  { %1051 = vmatprep.subr.bf16.mxu1 %v1050_v2  ;;  %v561_v2 = vld [vmem:[#allocation7 + $0x590] sm:$0xff] }
 0x15a   :  { %v1080_v3 = vpack.c.bf16 %v561_v2, %v559_v1  ;;  %v697_v2 = vld [vmem:[#allocation8 + $0xc0] sm:$0xff] }
 0x15c   :  { %1053 = vmatpush1.bf16.msra.mxu1 %v1052_v7  ;;  %v563_v7 = vld [vmem:[#allocation7 + $0x5a0] sm:$0xff] }
 0x15d   :  { %1055 = vmatprep.subr.bf16.mxu1 %v1054_v8  ;;  %v565_v8 = vld [vmem:[#allocation7 + $0x5b0] sm:$0xff] }
 0x15e   :  { %v1084_v9 = vpack.c.bf16 %v565_v8, %v563_v7  ;;  %v699_v8 = vld [vmem:[#allocation8 + $0xd0] sm:$0xff] }
 0x160   :  { %1057 = vmatpush1.bf16.msra.mxu1 %v1056_v13  ;;  %v567_v13 = vld [vmem:[#allocation7 + $0x5c0] sm:$0xff] }
 0x161   :  { %1059 = vmatprep.subr.bf16.mxu1 %v1058_v14  ;;  %v569_v14 = vld [vmem:[#allocation7 + $0x5d0] sm:$0xff] }
 0x162   :  { %v1088_v15 = vpack.c.bf16 %v569_v14, %v567_v13  ;;  %v701_v14 = vld [vmem:[#allocation8 + $0xe0] sm:$0xff] }
 0x164   :  { %1061 = vmatpush1.bf16.msra.mxu1 %v1060_v17  ;;  %v574_v17 = vld [vmem:[#allocation7 + $0x5f8] sm:$0xff] }
 0x165   :  { %1063 = vmatprep.subr.bf16.mxu1 %v1062_v40  ;;  %v1090_v18 = vpack.c.bf16 %v574_v17, %v572_v16  ;;  %v685_v17 = vld [vmem:[#allocation8 + $0x60] sm:$0xff] }
 0x168   :  { %1065 = vmatpush1.bf16.msra.mxu1 %v1064_v43  ;;  %v690_v43 = vld [vmem:[#allocation8 + $0x88] sm:$0xff] }
 0x169   :  { %1067 = vmatprep.subr.bf16.mxu1 %v1066_v46  ;;  %v1094_v44 = vpack.c.bf16 %v690_v43, %v689_v42  ;;  %v674_v46 = vld [vmem:[#allocation8 + $0x8] sm:$0xff] }
 0x16a   :  { %v1096_v47 = vpack.c.bf16 %v674_v46, %v673_v45  ;;  %v860_v45 = vld [vmem:[%s1447_s5] ss:$0 sm:$0xff] }
 0x16b   :  { %1095 = vmatprep.subr.bf16.mxu0 %v1094_v44 }
 0x16c   :  { %1069 = vmatpush1.bf16.msra.mxu1 %v1068_v49  ;;  %v692_v49 = vld [vmem:[#allocation8 + $0x98] sm:$0xff] }
 0x16d   :  { %1071 = vmatprep.subr.bf16.mxu1 %v1070_v52  ;;  %v1098_v50 = vpack.c.bf16 %v692_v49, %v691_v48  ;;  %v676_v52 = vld [vmem:[#allocation8 + $0x18] sm:$0xff]  ;;  %v861_v48 = vld [vmem:[%s1447_s5 + $0x1] ss:$0 sm:$0xff] }
 0x16e   :  { %v1100_v53 = vpack.c.bf16 %v676_v52, %v675_v51 }
 0x170   :  { %1073 = vmatpush1.bf16.msra.mxu1 %v1072_v55  ;;  %v694_v55 = vld [vmem:[#allocation8 + $0xa8] sm:$0xff] }
 0x171   :  { %1075 = vmatprep.subr.bf16.mxu1 %v1074_v58  ;;  %v1102_v56 = vpack.c.bf16 %v694_v55, %v693_v54  ;;  %v678_v58 = vld [vmem:[#allocation8 + $0x28] sm:$0xff] }
 0x172   :  { %v1104_v59 = vpack.c.bf16 %v678_v58, %v677_v57 }
 0x174   :  { %1077 = vmatpush1.bf16.msra.mxu1 %v1076_v61  ;;  %v696_v61 = vld [vmem:[#allocation8 + $0xb8] sm:$0xff] }
 0x175   :  { %1079 = vmatprep.subr.bf16.mxu1 %v1078_v0  ;;  %v1106_v62 = vpack.c.bf16 %v696_v61, %v695_v60  ;;  %v680_v0 = vld [vmem:[#allocation8 + $0x38] sm:$0xff] }
 0x176   :  { %v1108_v1 = vpack.c.bf16 %v680_v0, %v679_v63 }
 0x178   :  { %1081 = vmatpush1.bf16.msra.mxu1 %v1080_v3  ;;  %v698_v3 = vld [vmem:[#allocation8 + $0xc8] sm:$0xff] }
 0x179   :  { %1083 = vmatprep.subr.bf16.mxu1 %v1082_v6  ;;  %v1110_v4 = vpack.c.bf16 %v698_v3, %v697_v2  ;;  %v682_v6 = vld [vmem:[#allocation8 + $0x48] sm:$0xff] }
 0x17a   :  { %v1112_v7 = vpack.c.bf16 %v682_v6, %v681_v5 }
 0x17c   :  { %1085 = vmatpush1.bf16.msra.mxu1 %v1084_v9  ;;  %v700_v9 = vld [vmem:[#allocation8 + $0xd8] sm:$0xff] }
 0x17d   :  { %1087 = vmatprep.subr.bf16.mxu1 %v1086_v12  ;;  %v1114_v10 = vpack.c.bf16 %v700_v9, %v699_v8  ;;  %v684_v12 = vld [vmem:[#allocation8 + $0x58] sm:$0xff] }
 0x17e   :  { %v1116_v13 = vpack.c.bf16 %v684_v12, %v683_v11 }
 0x180   :  { %1089 = vmatpush1.bf16.msra.mxu1 %v1088_v15  ;;  %v702_v15 = vld [vmem:[#allocation8 + $0xe8] sm:$0xff] }
 0x181   :  { %1091 = vmatprep.subr.bf16.mxu1 %v1090_v18  ;;  %v1118_v16 = vpack.c.bf16 %v702_v15, %v701_v14  ;;  %v686_v18 = vld [vmem:[#allocation8 + $0x68] sm:$0xff] }
 0x21a   :  { %v328_v21 = vpop.f32.mrb[0].mxu1 }
 0x21b   :  { %v329_v22 = vadd.f32 %v328_v21, %v255_v19  ;;  %v330_v23 = vpop.f32.mrb[1].mxu1  ;;  %v571_v19 = vld [vmem:[#allocation7 + $0x5e0] sm:$0xff] }
 0x21c   :  { %v331_v24 = vadd.f32 %v330_v23, %v259_v20  ;;  %v573_v20 = vld [vmem:[#allocation7 + $0x5f0] sm:$0xff] }
 0x21d   :  { %v852_v25 = vmul.f32 -1.442695, %v329_v22  ;;  %v1092_v21 = vpack.c.bf16 %v573_v20, %v571_v19  ;;  %v1120_v19 = vpack.c.bf16 %v686_v18, %v685_v17  ;;  %v703_v20 = vld [vmem:[#allocation8 + $0xf0] sm:$0xff] }
 0x21e   :  { %v853_v27 = vmul.f32 -1.442695, %v331_v24 }
 0x21f   :  { %1144 = vpow2.f32 %v852_v25  ;;  %1093 = vmatpush1.bf16.msra.mxu1 %v1092_v21  ;;  %v704_v21 = vld [vmem:[#allocation8 + $0xf8] sm:$0xff] }
 0x220   :  { %1146 = vpow2.f32 %v853_v27 }
 0x229   :  { %v1145_v29 = vpop.eup %1144 }
 0x22a   :  { %v1147_v31 = vpop.eup %1146  ;;  %v339_v32 = vadd.f32 1.0, %v1145_v29 }
 0x22b   :  { %v340_v33 = vadd.f32 1.0, %v1147_v31 }
 0x22c   :  { %1148 = vrcp.f32 %v339_v32 }
 0x22d   :  { %1150 = vrcp.f32 %v340_v33 }
 0x236   :  { %v1149_v34 = vpop.eup %1148 }
 0x237   :  { %v1151_v35 = vpop.eup %1150  ;;  %v345_v37 = vmul.f32 %v1149_v34, %v329_v22  ;;  %v854_v22 = vld [vmem:[%s1446_s4 + $0x2] ss:$4 sm:$0x3] }
 0x238   :  { %v346_v36 = vmul.f32 %v1151_v35, %v331_v24  ;;  %v418_v23 = vrot.slane %v854_v22, %v1396_v28  ;;  %v422_v24 = vrot.slane %v854_v22, %v1401_v30  ;;  %v1122_v22 = vpack.c.bf16 %v704_v21, %v703_v20 }
 0x239   :  { %v825_v20 = vand.u32 127, %v86_v26 }
 0x23a   :  { %489 = vmatprep.mubr.f32.mxu0 %v346_v36 }
 0x23b   :  { %490 = vmatmul.mubr.f32.vlgmr.msra.gmra.mrb[2].mxu0 %v345_v37  ;;  %vm826_vm3 = vcmp.ge.s32.totalorder %v825_v20, 64 }
 0x23c   :  { %1097 = vmatpush3.bf16.msra.mxu0 %v1096_v47 }
 0x23d   :  { %1099 = vmatprep.subr.bf16.mxu0 %v1098_v50 }
 0x240   :  { %1101 = vmatpush3.bf16.msra.mxu0 %v1100_v53 }
 0x241   :  { %1103 = vmatprep.subr.bf16.mxu0 %v1102_v56 }
 0x244   :  { %1105 = vmatpush3.bf16.msra.mxu0 %v1104_v59 }
 0x245   :  { %1107 = vmatprep.subr.bf16.mxu0 %v1106_v62 }
 0x248   :  { %1109 = vmatpush3.bf16.msra.mxu0 %v1108_v1  ;;  %v862_v1 = vld [vmem:[%s1447_s5 + $0x2] ss:$0 sm:$0xff]  ;;  %s1305_s5 = smov [#allocation10]  }
 0x249   :  { %1111 = vmatprep.subr.bf16.mxu0 %v1110_v4  ;;  %s837_s10 = sshll.u32 %s1305_s5, 4  ;;  %s838_s10 = int_to_ptr.vmem [resolvable:$true] %s837_s10 }
 0x24a   :  { %s1266_s11 = scalar_lea.vmem %s838_s10, 128  ;;  %p1271_p5 = scmp.lt.s32.totalorder %s838_s10, %s838_s10 }
 0x24b   :  { %p1267_p4 = scmp.ne.s32.totalorder %s838_s10, %s1266_s11  ;;  %p1272_p6 = scmp.lt.s32.totalorder %s1266_s11, %s1266_s11 }
 0x24c   :  { %1113 = vmatpush3.bf16.msra.mxu0 %v1112_v7 }
 0x24d   :  { %1115 = vmatprep.subr.bf16.mxu0 %v1114_v10  ;;  %p1273_p7 = por %p1272_p6, %p1271_p5 }
 0x24f   :  { %p1274_p8 = pnand %p1273_p7, %p1267_p4 }
 0x250   :  { %1117 = vmatpush3.bf16.msra.mxu0 %v1116_v13 }
 0x251   :  { %1119 = vmatprep.subr.bf16.mxu0 %v1118_v16 }
 0x254   :  { %1121 = vmatpush3.bf16.msra.mxu0 %v1120_v19 }
 0x255   :  { %1123 = vmatprep.subr.bf16.mxu0 %v1122_v22 }
 0x30e   :  { %v491_v25 = vpop.f32.mrb[2].mxu0 }
 0x30f   :  { %v492_v27 = vadd.f32 %v491_v25, %v418_v23  ;;  %v493_v29 = vpop.f32.mrb[3].mxu0  ;;  %v687_v23 = vld [vmem:[#allocation8 + $0x70] sm:$0xff] }
 0x310   :  { %v494_v31 = vadd.f32 %v493_v29, %v422_v24  ;;  %v688_v24 = vld [vmem:[#allocation8 + $0x78] sm:$0xff] }
 0x311   :  { %v855_v32 = vmul.f32 -1.442695, %v492_v27  ;;  %v1124_v25 = vpack.c.bf16 %v688_v24, %v687_v23 }
 0x312   :  { %v856_v33 = vmul.f32 -1.442695, %v494_v31 }
 0x313   :  { %1152 = vpow2.f32 %v855_v32  ;;  %1125 = vmatpush3.bf16.msra.mxu0 %v1124_v25 }
 0x314   :  { %1154 = vpow2.f32 %v856_v33 }
 0x31d   :  { %v1153_v34 = vpop.eup %1152 }
 0x31e   :  { %v1155_v35 = vpop.eup %1154  ;;  %v502_v36 = vadd.f32 1.0, %v1153_v34 }
 0x31f   :  { %v503_v37 = vadd.f32 1.0, %v1155_v35 }
 0x320   :  { %1156 = vrcp.f32 %v502_v36 }
 0x321   :  { %1158 = vrcp.f32 %v503_v37 }
 0x32a   :  { %v1157_v38 = vpop.eup %1156 }
 0x32b   :  { %v1159_v39 = vpop.eup %1158  ;;  %v508_v41 = vmul.f32 %v1157_v38, %v492_v27  ;;  %v857_v27 = vld [vmem:[%s1446_s4 + $0x3] ss:$4 sm:$0x3] }
 0x32c   :  { %v509_v40 = vmul.f32 %v1159_v39, %v494_v31  ;;  %v581_v29 = vrot.slane %v857_v27, %v1396_v28  ;;  %v585_v31 = vrot.slane %v857_v27, %v1401_v30 }
 0x32e   :  { %652 = vmatprep.mubr.f32.mxu1 %v509_v40 }
 0x32f   :  { %653 = vmatmul.mubr.f32.vlgmr.msra.gmra.mrb[2].mxu1 %v508_v41 }
 0x402   :  { %v654_v32 = vpop.f32.mrb[2].mxu1 }
 0x403   :  { %v655_v33 = vadd.f32 %v654_v32, %v581_v29  ;;  %v656_v34 = vpop.f32.mrb[3].mxu1 }
 0x404   :  { %v657_v35 = vadd.f32 %v656_v34, %v585_v31 }
 0x405   :  { %v858_v36 = vmul.f32 -1.442695, %v655_v33 }
 0x406   :  { %v859_v37 = vmul.f32 -1.442695, %v657_v35 }
 0x407   :  { %1160 = vpow2.f32 %v858_v36 }
 0x408   :  { %1162 = vpow2.f32 %v859_v37 }
 0x411   :  { %v1161_v38 = vpop.eup %1160 }
 0x412   :  { %v1163_v39 = vpop.eup %1162  ;;  %v665_v40 = vadd.f32 1.0, %v1161_v38 }
 0x413   :  { %v666_v41 = vadd.f32 1.0, %v1163_v39 }
 0x414   :  { %1164 = vrcp.f32 %v665_v40 }
 0x415   :  { %1166 = vrcp.f32 %v666_v41 }
 0x41e   :  { %v1165_v42 = vpop.eup %1164 }
 0x41f   :  { %v1167_v43 = vpop.eup %1166  ;;  %v671_v28 = vmul.f32 %v1165_v42, %v655_v33 }
 0x420   :  { %v672_v44 = vmul.f32 %v1167_v43, %v657_v35 }
 0x422   :  { %774 = vmatprep.mubr.f32.mxu0 %v672_v44 }
 0x423   :  { %775 = vmatmul.mubr.f32.vlgmr.msra.gmra.mrb[4].mxu0 %v671_v28 }
 0x4f6   :  { %v895_v30 = vpop.f32.mrb[4].mxu0 }
 0x4f7   :  { %v896_v46 = vpop.f32.mrb[5].mxu0 }
 0x4f8   :  { %v897_v47 = vadd.f32 %v896_v46, %v895_v30 }
 0x4fa   :  { %v777_v49 = vadd.f32 %v897_v47, %v860_v45 }
 0x4fc   :  { %v786_v50 = vsub.f32 %v861_v48, %v777_v49 }
 0x4fe   :  { %v788_v51 = vand.u32 2147483647, %v786_v50  ;;  %v787_v62 = vmax.f32 %v786_v50, 0.0 }
 0x500   :  { %v789_v52 = vsub.f32 0.0, %v788_v51 }
 0x502   :  { %v790_v53 = vmul.f32 1.442695, %v789_v52 }
 0x504   :  { %1168 = vpow2.f32 %v790_v53 }
 0x50e   :  { %v1169_v54 = vpop.eup %1168 }
 0x50f   :  { %v792_v55 = vadd.f32 1.0, %v1169_v54  ;;  %v795_v56 = vmul.f32 -0.5, %v1169_v54  ;;  %v798_v58 = vand.u32 2147483647, %v1169_v54 }
 0x511   :  { %1170 = vlog2.f32 %v792_v55  ;;  %v796_v57 = vadd.f32 1.0, %v795_v56  ;;  %vm799_vm1 = vcmp.lt.f32.partialorder %v798_v58, 0.0004427343 }
 0x513   :  { %v797_v61 = vmul.f32 %v1169_v54, %v796_v57 }
 0x51b   :  { %v1171_v59 = vpop.eup %1170 }
 0x51c   :  { %v794_v60 = vmul.f32 0.6931472, %v1171_v59 }
 0x51e   :  { %v800_v63 = vsel %vm799_vm1, %v797_v61, %v794_v60 }
 0x51f   :  { %v801_v0 = vadd.f32 %v800_v63, %v787_v62 }
 0x521   :  { %v802_v2 = vsub.f32 %v861_v48, %v801_v0 }
 0x523   :  { %v807_v3 = vsub.f32 %v802_v2, %v862_v1 }
 0x525   :  { %v809_v4 = vand.u32 2147483647, %v807_v3  ;;  %v808_v15 = vmax.f32 %v807_v3, 0.0 }
 0x527   :  { %v810_v5 = vsub.f32 0.0, %v809_v4 }
 0x529   :  { %v811_v6 = vmul.f32 1.442695, %v810_v5 }
 0x52b   :  { %1172 = vpow2.f32 %v811_v6 }
 0x535   :  { %v1173_v7 = vpop.eup %1172 }
 0x536   :  { %v813_v8 = vadd.f32 1.0, %v1173_v7  ;;  %v816_v9 = vmul.f32 -0.5, %v1173_v7  ;;  %v819_v11 = vand.u32 2147483647, %v1173_v7 }
 0x538   :  { %1174 = vlog2.f32 %v813_v8  ;;  %v817_v10 = vadd.f32 1.0, %v816_v9  ;;  %vm820_vm2 = vcmp.lt.f32.partialorder %v819_v11, 0.0004427343 }
 0x53a   :  { %v818_v14 = vmul.f32 %v1173_v7, %v817_v10 }
 0x542   :  { %v1175_v12 = vpop.eup %1174 }
 0x543   :  { %v815_v13 = vmul.f32 0.6931472, %v1175_v12 }
 0x545   :  { %v821_v16 = vsel %vm820_vm2, %v818_v14, %v815_v13 }
 0x546   :  { %v822_v17 = vadd.f32 %v821_v16, %v808_v15 }
 0x548   :  { %v823_v18 = vadd.f32 %v862_v1, %v822_v17 }
 0x54a   :  { %v827_v19 = vmul.f32 1.442695, %v823_v18 }
 0x54c   :  { %1176 = vpow2.f32 %v827_v19 }
 0x556   :  { %v1177_v21 = vpop.eup %1176 }
 0x557   :  { %v829_v22 = vsel %vm826_vm3, %v1177_v21, %v777_v49 }
 0x558   :  { %830 = vst [vmem:[#allocation10] sm:$0xff] %v829_v22 }
 0x559   :  { %1277 = shalt.err (!%p1274_p8)
}
 0x55a   :  { %s1278_s15 = scalar_lea.hbm %s1448_s6, 128 }
 0x55b   :  { %p1279_p9 = scmp.ne.s32.totalorder %s1448_s6, %s1278_s15  ;;  %p1282_p10 = scmp.lt.u32.totalorder %s1278_s15, %s1448_s6 }
 0x55d   :  { %p1284_p11 = pnand %p1282_p10, %p1279_p9 }
 0x55f   :  { %1287 = shalt.err (!%p1284_p11)
}
 0x560   :  { %840 = dma.vmem_to_hbm [thread:$0]  %s838_s10, 128, %s1448_s6, [#allocation4]  }
 0x561   :  { %1294 = dma.done.wait [#allocation4], 128  }
 0x562   :  { %1295 = vsyncadd [#allocation4], 4294967168 }
 0x563   :  { %844 = vsyncpa [#allocation3], 1 }
 0x564   :  { %845 = vsyncpa [#allocation6], 1 }
 0x565   :  { %846 = vsyncpa [#allocation9], 1 }
 0x566   :  { %847 = vsyncpa [#allocation4], 1 }

</bundles_post_ra>
